<compile_context>
chip_gen: v6e
topology: v6e:2x2x1
jax: 0.10.0
libtpu: 0.0.40
codegen_flags: <defaults>
</compile_context>

<pallas_src>
import functools

import jax
import jax.numpy as jnp
from jax.experimental import pallas as pl
from jax.experimental.pallas import tpu as pltpu


def _round_up(x, m):
    return ((x + m - 1) // m) * m


def _mlp_kernel(x_ref, w1_ref, b1_ref, w2_ref, b2_ref, o_ref):
    # fc1: [bb, D] @ [D, 32] -> f32 accumulator, +bias, ReLU.  All f32 (matches
    # the PyTorch module numerics); the kernel is HBM-bound so MXU time is slack.
    h = jnp.dot(x_ref[...], w1_ref[...], preferred_element_type=jnp.float32)
    h = jnp.maximum(h + b1_ref[...], 0.0)
    # fc2: [bb, 32] @ [32, C] -> f32, +bias.
    out = jnp.dot(h, w2_ref[...], preferred_element_type=jnp.float32)
    o_ref[...] = (out + b2_ref[...]).astype(o_ref.dtype)


@functools.partial(jax.jit, static_argnames=("input_size", "block_b"))
def mlp_1_relu_forward(x, w1, b1, w2, b2, *, input_size, block_b=1024):
    """Matches PyTorch: x = x.view(-1, input_size); fc1; relu; fc2.

    x: any shape whose total size is a multiple of input_size.
    w1: [input_size, 32], b1: [32], w2: [32, num_classes], b2: [num_classes].
    """
    x2d = x.reshape(-1, input_size)
    B, D = x2d.shape
    H = w1.shape[1]
    C = w2.shape[1]
    out_dtype = x2d.dtype

    b1_2d = b1.reshape(1, H).astype(jnp.float32)
    b2_2d = b2.reshape(1, C).astype(jnp.float32)

    # Batch tile: large enough to amortize per-step overhead, multiple of 8
    # (f32 sublane packing).  Double-buffered x tiles stay well inside the
    # default scoped VMEM on v5e/v6e/v7x for typical input_size.
    bb = min(block_b, _round_up(B, 8))
    grid = (pl.cdiv(B, bb),)

    itemsize = x2d.dtype.itemsize
    cost = pl.CostEstimate(
        flops=2 * B * (D * H + H * C),
        transcendentals=0,
        bytes_accessed=(B * D + D * H + H + H * C + C + B * C) * itemsize,
    )

    out = pl.pallas_call(
        _mlp_kernel,
        out_shape=jax.ShapeDtypeStruct((B, C), out_dtype),
        grid=grid,
        in_specs=[
            pl.BlockSpec((bb, D), lambda i: (i, 0)),   # x tile (pipelined DMA)
            pl.BlockSpec((D, H), lambda i: (0, 0)),    # w1 (VMEM-resident)
            pl.BlockSpec((1, H), lambda i: (0, 0)),    # b1 (resident)
            pl.BlockSpec((H, C), lambda i: (0, 0)),    # w2 (resident)
            pl.BlockSpec((1, C), lambda i: (0, 0)),    # b2 (resident)
        ],
        out_specs=pl.BlockSpec((bb, C), lambda i: (i, 0)),  # unpadded (B, C)
        compiler_params=pltpu.CompilerParams(
            dimension_semantics=("parallel",),         # megacore on v7x
        ),
        cost_estimate=cost,
    )(x2d, w1, b1_2d, w2, b2_2d)

    return out


def init_params(key, input_size, num_classes, hidden=32, dtype=jnp.float32):
    """Deterministic PyTorch-Linear-style init: U(-1/sqrt(fan_in), 1/sqrt(fan_in))."""
    k1, k2, k3, k4 = jax.random.split(key, 4)
    bound1 = 1.0 / jnp.sqrt(jnp.array(input_size, dtype))
    bound2 = 1.0 / jnp.sqrt(jnp.array(hidden, dtype))
    # Stored as [in, out] (transposed vs. torch's [out, in]).
    w1 = jax.random.uniform(k1, (input_size, hidden), dtype, -bound1, bound1)
    b1 = jax.random.uniform(k2, (hidden,), dtype, -bound1, bound1)
    w2 = jax.random.uniform(k3, (hidden, num_classes), dtype, -bound2, bound2)
    b2 = jax.random.uniform(k4, (num_classes,), dtype, -bound2, bound2)
    return w1, b1, w2, b2


if __name__ == "__main__":
    key = jax.random.PRNGKey(0)
    kx, kp = jax.random.split(key)

    # Small shapes consistent with the module: batch of 2 images with
    # 4 channels, 16x16 spatial -> input_size = 1024, num_classes = 10.
    batch, chan, spatial = 2, 4, 16
    input_size = chan * spatial * spatial   # 1024
    num_classes = 10

    x = jax.random.normal(kx, (batch, chan, spatial, spatial), jnp.float32)
    w1, b1, w2, b2 = init_params(kp, input_size, num_classes)

    out = mlp_1_relu_forward(x, w1, b1, w2, b2, input_size=input_size)
    out = jax.block_until_ready(out)
    assert out.shape == (batch, num_classes)

    # Pure-JAX f32 reference (matches the PyTorch ground-truth numerics).
    x2d = x.reshape(-1, input_size)
    h_ref = jnp.maximum(
        jnp.dot(x2d, w1, preferred_element_type=jnp.float32) + b1, 0.0)
    ref = jnp.dot(h_ref, w2, preferred_element_type=jnp.float32) + b2
    assert jnp.allclose(out, ref, atol=2e-2, rtol=2e-2), (
        float(jnp.max(jnp.abs(out - ref))))

    print("KERNEL_OK")
</pallas_src>

<mosaic_0001>
module attributes {stable_mosaic.version = 11 : i64} {
  func.func @_mlp_kernel(%arg0: i32, %arg1: memref<8x1024xf32, #tpu.memory_space<vmem>>, %arg2: memref<1024x32xf32, #tpu.memory_space<vmem>>, %arg3: memref<1x32xf32, #tpu.memory_space<vmem>>, %arg4: memref<32x10xf32, #tpu.memory_space<vmem>>, %arg5: memref<1x10xf32, #tpu.memory_space<vmem>>, %arg6: memref<8x10xf32, #tpu.memory_space<vmem>>) attributes {dimension_semantics = [#tpu.dimension_semantics<parallel>], iteration_bounds = array<i64: 1>, scalar_prefetch = 0 : i64, scratch_operands = 0 : i64, tpu.core_type = #tpu.core_type<tc>, window_params = [{transform_indices = @transform_0, window_bounds = array<i64: 8, 1024>}, {pipeline_mode = #tpu.pipeline_mode<synchronous>, transform_indices = @transform_1, window_bounds = array<i64: 1024, 32>}, {pipeline_mode = #tpu.pipeline_mode<synchronous>, transform_indices = @transform_2, window_bounds = array<i64: 1, 32>}, {pipeline_mode = #tpu.pipeline_mode<synchronous>, transform_indices = @transform_3, window_bounds = array<i64: 32, 10>}, {pipeline_mode = #tpu.pipeline_mode<synchronous>, transform_indices = @transform_4, window_bounds = array<i64: 1, 10>}, {transform_indices = @transform_5, window_bounds = array<i64: 8, 10>}]} {
    %c0 = arith.constant 0 : index
    %c0_0 = arith.constant 0 : index
    %0 = vector.load %arg1[%c0, %c0_0] : memref<8x1024xf32, #tpu.memory_space<vmem>>, vector<8x1024xf32>
    %c0_1 = arith.constant 0 : index
    %c0_2 = arith.constant 0 : index
    %1 = vector.load %arg2[%c0_1, %c0_2] : memref<1024x32xf32, #tpu.memory_space<vmem>>, vector<1024x32xf32>
    %cst = arith.constant dense<0.000000e+00> : vector<8x32xf32>
    %2 = tpu.matmul %0, %1, %cst {dimension_numbers = #tpu.dot_dimension_numbers<[1], [0], [0], [1], [0, 0, 1, 1], [], []>} : vector<8x1024xf32>, vector<1024x32xf32>, vector<8x32xf32> -> vector<8x32xf32>
    %c0_3 = arith.constant 0 : index
    %c0_4 = arith.constant 0 : index
    %3 = vector.load %arg3[%c0_3, %c0_4] : memref<1x32xf32, #tpu.memory_space<vmem>>, vector<1x32xf32>
    %4 = vector.broadcast %3 : vector<1x32xf32> to vector<8x32xf32>
    %5 = arith.addf %2, %4 : vector<8x32xf32>
    %cst_5 = arith.constant 0.000000e+00 : f32
    %6 = vector.broadcast %cst_5 : f32 to vector<8x32xf32>
    %7 = arith.maximumf %5, %6 : vector<8x32xf32>
    %c0_6 = arith.constant 0 : index
    %c0_7 = arith.constant 0 : index
    %8 = vector.load %arg4[%c0_6, %c0_7] : memref<32x10xf32, #tpu.memory_space<vmem>>, vector<32x10xf32>
    %cst_8 = arith.constant dense<0.000000e+00> : vector<8x10xf32>
    %9 = tpu.matmul %7, %8, %cst_8 {dimension_numbers = #tpu.dot_dimension_numbers<[1], [0], [0], [1], [0, 0, 1, 1], [], []>} : vector<8x32xf32>, vector<32x10xf32>, vector<8x10xf32> -> vector<8x10xf32>
    %c0_9 = arith.constant 0 : index
    %c0_10 = arith.constant 0 : index
    %10 = vector.load %arg5[%c0_9, %c0_10] : memref<1x10xf32, #tpu.memory_space<vmem>>, vector<1x10xf32>
    %11 = vector.broadcast %10 : vector<1x10xf32> to vector<8x10xf32>
    %12 = arith.addf %9, %11 : vector<8x10xf32>
    %c0_11 = arith.constant 0 : index
    %c0_12 = arith.constant 0 : index
    %13 = vector.load %arg6[%c0_11, %c0_12] : memref<8x10xf32, #tpu.memory_space<vmem>>, vector<8x10xf32>
    tpu.vector_store %arg6[%c0_11, %c0_12], %12 {strides = array<i32>} : memref<8x10xf32, #tpu.memory_space<vmem>>, vector<8x10xf32>,
    return
  }
  func.func @transform_0(%arg0: i32) -> (i32, i32) {
    %c0_i32 = arith.constant 0 : i32
    %c0_i32_0 = arith.constant 0 : i32
    return %arg0, %c0_i32 : i32, i32
  }
  func.func @transform_1(%arg0: i32) -> (i32, i32) {
    %c0_i32 = arith.constant 0 : i32
    %c0_i32_0 = arith.constant 0 : i32
    %c0_i32_1 = arith.constant 0 : i32
    return %c0_i32, %c0_i32_0 : i32, i32
  }
  func.func @transform_2(%arg0: i32) -> (i32, i32) {
    %c0_i32 = arith.constant 0 : i32
    %c0_i32_0 = arith.constant 0 : i32
    %c0_i32_1 = arith.constant 0 : i32
    return %c0_i32, %c0_i32_0 : i32, i32
  }
  func.func @transform_3(%arg0: i32) -> (i32, i32) {
    %c0_i32 = arith.constant 0 : i32
    %c0_i32_0 = arith.constant 0 : i32
    %c0_i32_1 = arith.constant 0 : i32
    return %c0_i32, %c0_i32_0 : i32, i32
  }
  func.func @transform_4(%arg0: i32) -> (i32, i32) {
    %c0_i32 = arith.constant 0 : i32
    %c0_i32_0 = arith.constant 0 : i32
    %c0_i32_1 = arith.constant 0 : i32
    return %c0_i32, %c0_i32_0 : i32, i32
  }
  func.func @transform_5(%arg0: i32) -> (i32, i32) {
    %c0_i32 = arith.constant 0 : i32
    %c0_i32_0 = arith.constant 0 : i32
    return %arg0, %c0_i32 : i32, i32
  }
}

</mosaic_0001>

<bundles_post_ra>
// kernel: mlp_1_relu_forward.1
= control target key start
LH: loop header
LB: loop body
LE: loop exit
PB: predicated region body
PF: predicated region fallthrough
CT: control target
= control target key end

     0   :  { %10 = vsyncpa [#allocation3], 0  ;;  %v835_v30 = vmov 1983009808   ;;  %v179_v32 = vlaneseq  ;;  %vm837_vm0 = vmmov 0   ;;  %vm544_vm1 = vcmask 261120   ;;  %s1310_s0 = inlined_call_operand.vmem [shape: f32[2,1024], index: 0, kind: input, shape index: {}]   ;;  %s1311_s1 = inlined_call_operand.vmem [shape: f32[1024,32], index: 1, kind: input, shape index: {}]   ;;  %s1312_s2 = inlined_call_operand.vmem [shape: f32[1,32], index: 2, kind: input, shape index: {}]   ;;  %s1313_s3 = inlined_call_operand.vmem [shape: f32[32,10], index: 3, kind: input, shape index: {}]   ;;  %s1314_s4 = inlined_call_operand.vmem [shape: f32[1,10], index: 4, kind: input, shape index: {}]   ;;  %s1315_s5 = inlined_call_operand.hbm [shape: f32[2,10], index: 5, kind: output, shape index: {}]  }
   0x1   :  { %v60_v0 = vld [vmem:[%s1311_s1 + $0xf8] sm:$0xff]  ;;  %v59_v4 = vld [vmem:[%s1311_s1 + $0xf0] sm:$0xff]  ;;  %v58_v8 = vld [vmem:[%s1311_s1 + $0xe8] sm:$0xff]  ;;  %v177_v31 = vunpack.c.l.s4 %v835_v30  ;;  %vm618_vm2 = vcmask 80896  }
   0x2   :  { %v92_v1 = vld [vmem:[%s1311_s1 + $0x1f8] sm:$0xff]  ;;  %639 = vmatprep.subr.mxu0 %v60_v0  ;;  %v91_v5 = vld [vmem:[%s1311_s1 + $0x1f0] sm:$0xff]  ;;  %v90_v9 = vld [vmem:[%s1311_s1 + $0x1e8] sm:$0xff]  ;;  %v180_v42 = vshrl.u32 %v179_v32, 7 }
   0x3   :  { %674 = vmatprep.subr.mxu1 %v92_v1  ;;  %v44_v2 = vld [vmem:[%s1311_s1 + $0x78] sm:$0xff]  ;;  %v43_v6 = vld [vmem:[%s1311_s1 + $0x70] sm:$0xff]  ;;  %v42_v10 = vld [vmem:[%s1311_s1 + $0x68] sm:$0xff]  ;;  %v178_v41 = vunpack.c.0.s8 %v177_v31 }
   0x4   :  { %v76_v3 = vld [vmem:[%s1311_s1 + $0x178] sm:$0xff]  ;;  %640 = vmatpush3.msra.mxu0 %v44_v2  ;;  %v75_v7 = vld [vmem:[%s1311_s1 + $0x170] sm:$0xff]  ;;  %v74_v11 = vld [vmem:[%s1311_s1 + $0x168] sm:$0xff] }
   0x5   :  { %675 = vmatpush3.msra.mxu1 %v76_v3  ;;  %641 = vmatprep.subr.mxu0 %v59_v4  ;;  %v57_v12 = vld [vmem:[%s1311_s1 + $0xe0] sm:$0xff]  ;;  %v56_v16 = vld [vmem:[%s1311_s1 + $0xd8] sm:$0xff]  ;;  %v55_v20 = vld [vmem:[%s1311_s1 + $0xd0] sm:$0xff]  ;;  %v1021_v55 = vsub.s32 %v178_v41, %v180_v42 }
   0x6   :  { %676 = vmatprep.subr.mxu1 %v91_v5  ;;  %642 = vmatpush3.msra.mxu0 %v43_v6  ;;  %v89_v13 = vld [vmem:[%s1311_s1 + $0x1e0] sm:$0xff]  ;;  %v88_v17 = vld [vmem:[%s1311_s1 + $0x1d8] sm:$0xff]  ;;  %v87_v21 = vld [vmem:[%s1311_s1 + $0x1d0] sm:$0xff] }
   0x7   :  { %677 = vmatpush3.msra.mxu1 %v75_v7  ;;  %643 = vmatprep.subr.mxu0 %v58_v8  ;;  %v41_v14 = vld [vmem:[%s1311_s1 + $0x60] sm:$0xff]  ;;  %v40_v18 = vld [vmem:[%s1311_s1 + $0x58] sm:$0xff]  ;;  %v39_v22 = vld [vmem:[%s1311_s1 + $0x50] sm:$0xff] }
   0x8   :  { %678 = vmatprep.subr.mxu1 %v90_v9  ;;  %v73_v15 = vld [vmem:[%s1311_s1 + $0x160] sm:$0xff]  ;;  %644 = vmatpush3.msra.mxu0 %v42_v10  ;;  %v72_v19 = vld [vmem:[%s1311_s1 + $0x158] sm:$0xff]  ;;  %v71_v23 = vld [vmem:[%s1311_s1 + $0x150] sm:$0xff] }
   0x9   :  { %679 = vmatpush3.msra.mxu1 %v74_v11  ;;  %645 = vmatprep.subr.mxu0 %v57_v12  ;;  %v54_v24 = vld [vmem:[%s1311_s1 + $0xc8] sm:$0xff]  ;;  %v53_v28 = vld [vmem:[%s1311_s1 + $0xc0] sm:$0xff]  ;;  %v52_v35 = vld [vmem:[%s1311_s1 + $0xb8] sm:$0xff] }
   0xa   :  { %680 = vmatprep.subr.mxu1 %v89_v13  ;;  %646 = vmatpush3.msra.mxu0 %v41_v14  ;;  %v86_v25 = vld [vmem:[%s1311_s1 + $0x1c8] sm:$0xff]  ;;  %v85_v29 = vld [vmem:[%s1311_s1 + $0x1c0] sm:$0xff]  ;;  %v84_v36 = vld [vmem:[%s1311_s1 + $0x1b8] sm:$0xff] }
   0xb   :  { %681 = vmatpush3.msra.mxu1 %v73_v15  ;;  %647 = vmatprep.subr.mxu0 %v56_v16  ;;  %v38_v26 = vld [vmem:[%s1311_s1 + $0x48] sm:$0xff]  ;;  %v37_v33 = vld [vmem:[%s1311_s1 + $0x40] sm:$0xff]  ;;  %v36_v37 = vld [vmem:[%s1311_s1 + $0x38] sm:$0xff] }
   0xc   :  { %682 = vmatprep.subr.mxu1 %v88_v17  ;;  %648 = vmatpush3.msra.mxu0 %v40_v18  ;;  %v70_v27 = vld [vmem:[%s1311_s1 + $0x148] sm:$0xff]  ;;  %v69_v34 = vld [vmem:[%s1311_s1 + $0x140] sm:$0xff]  ;;  %v68_v38 = vld [vmem:[%s1311_s1 + $0x138] sm:$0xff] }
   0xd   :  { %683 = vmatpush3.msra.mxu1 %v72_v19  ;;  %649 = vmatprep.subr.mxu0 %v55_v20  ;;  %v51_v39 = vld [vmem:[%s1311_s1 + $0xb0] sm:$0xff]  ;;  %v50_v45 = vld [vmem:[%s1311_s1 + $0xa8] sm:$0xff]  ;;  %v49_v49 = vld [vmem:[%s1311_s1 + $0xa0] sm:$0xff] }
   0xe   :  { %684 = vmatprep.subr.mxu1 %v87_v21  ;;  %650 = vmatpush3.msra.mxu0 %v39_v22  ;;  %v83_v40 = vld [vmem:[%s1311_s1 + $0x1b0] sm:$0xff]  ;;  %v82_v46 = vld [vmem:[%s1311_s1 + $0x1a8] sm:$0xff]  ;;  %v81_v50 = vld [vmem:[%s1311_s1 + $0x1a0] sm:$0xff] }
   0xf   :  { %685 = vmatpush3.msra.mxu1 %v71_v23  ;;  %651 = vmatprep.subr.mxu0 %v54_v24  ;;  %v35_v43 = vld [vmem:[%s1311_s1 + $0x30] sm:$0xff]  ;;  %v34_v47 = vld [vmem:[%s1311_s1 + $0x28] sm:$0xff]  ;;  %v33_v51 = vld [vmem:[%s1311_s1 + $0x20] sm:$0xff] }
  0x10   :  { %686 = vmatprep.subr.mxu1 %v86_v25  ;;  %652 = vmatpush3.msra.mxu0 %v38_v26  ;;  %v67_v44 = vld [vmem:[%s1311_s1 + $0x130] sm:$0xff]  ;;  %v66_v48 = vld [vmem:[%s1311_s1 + $0x128] sm:$0xff]  ;;  %v65_v52 = vld [vmem:[%s1311_s1 + $0x120] sm:$0xff] }
  0x11   :  { %687 = vmatpush3.msra.mxu1 %v70_v27  ;;  %653 = vmatprep.subr.mxu0 %v53_v28  ;;  %v48_v53 = vld [vmem:[%s1311_s1 + $0x98] sm:$0xff]  ;;  %v801_v57 = vld [vmem:[%s1310_s0] ss:$16 sps:$4 sm:$0xff]   ;;  %v805_v60 = vld [vmem:[%s1310_s0 + $0x4] ss:$16 sps:$4 sm:$0xff]  }
  0x12   :  { %688 = vmatprep.subr.mxu1 %v85_v29  ;;  %654 = vmatpush3.msra.mxu0 %v37_v33  ;;  %v80_v54 = vld [vmem:[%s1311_s1 + $0x198] sm:$0xff]  ;;  %v803_v59 = vld [vmem:[%s1310_s0 + $0x20] ss:$16 sps:$4 sm:$0xff]   ;;  %v182_v63 = vrot.slane %v801_v57, %v1021_v55  ;;  %v806_v0 = vld [vmem:[%s1310_s0 + $0x24] ss:$16 sps:$4 sm:$0xff]   ;;  %v189_v6 = vrot.slane %v805_v60, %v1021_v55 }
  0x13   :  { %689 = vmatpush3.msra.mxu1 %v69_v34  ;;  %655 = vmatprep.subr.mxu0 %v52_v35  ;;  %v32_v56 = vld [vmem:[%s1311_s1 + $0x18] sm:$0xff]  ;;  %v47_v61 = vld [vmem:[%s1311_s1 + $0x90] sm:$0xff]  ;;  %v196_v3 = vrot.slane %v803_v59, %v1021_v55  ;;  %v46_v4 = vld [vmem:[%s1311_s1 + $0x88] sm:$0xff]  ;;  %v203_v7 = vrot.slane %v806_v0, %v1021_v55 }
  0x14   :  { %690 = vmatprep.subr.mxu1 %v84_v36  ;;  %656 = vmatpush3.msra.mxu0 %v36_v37  ;;  %v64_v58 = vld [vmem:[%s1311_s1 + $0x118] sm:$0xff]  ;;  %v79_v62 = vld [vmem:[%s1311_s1 + $0x190] sm:$0xff]  ;;  %v78_v5 = vld [vmem:[%s1311_s1 + $0x188] sm:$0xff] }
  0x15   :  { %691 = vmatpush3.msra.mxu1 %v68_v38  ;;  %657 = vmatprep.subr.mxu0 %v51_v39  ;;  %v31_v1 = vld [vmem:[%s1311_s1 + $0x10] sm:$0xff]  ;;  %v30_v8 = vld [vmem:[%s1311_s1 + $0x8] sm:$0xff]  ;;  %v45_v10 = vld [vmem:[%s1311_s1 + $0x80] sm:$0xff]  ;;  %v205_v12 = vcombine.high %v182_v63, %v196_v3  ;;  %v204_v14 = vcombine.low %v182_v63, %v196_v3  ;;  %v207_v16 = vcombine.high %v189_v6, %v203_v7 }
  0x16   :  { %692 = vmatprep.subr.mxu1 %v83_v40  ;;  %658 = vmatpush3.msra.mxu0 %v35_v43  ;;  %v63_v2 = vld [vmem:[%s1311_s1 + $0x110] sm:$0xff]  ;;  %v62_v9 = vld [vmem:[%s1311_s1 + $0x108] sm:$0xff]  ;;  %v77_v11 = vld [vmem:[%s1311_s1 + $0x180] sm:$0xff]  ;;  %v206_v18 = vcombine.low %v189_v6, %v203_v7 }
  0x17   :  { %693 = vmatpush3.msra.mxu1 %v67_v44  ;;  %659 = vmatprep.subr.mxu0 %v50_v45  ;;  %v29_v13 = vld [vmem:[%s1311_s1] sm:$0xff]  ;;  %v124_v17 = vld [vmem:[%s1311_s1 + $0x2f8] sm:$0xff]  ;;  %v123_v22 = vld [vmem:[%s1311_s1 + $0x2f0] sm:$0xff] }
  0x18   :  { %694 = vmatprep.subr.mxu1 %v82_v46  ;;  %660 = vmatpush3.msra.mxu0 %v34_v47  ;;  %v61_v15 = vld [vmem:[%s1311_s1 + $0x100] sm:$0xff]  ;;  %v156_v19 = vld [vmem:[%s1311_s1 + $0x3f8] sm:$0xff]  ;;  %v155_v23 = vld [vmem:[%s1311_s1 + $0x3f0] sm:$0xff] }
  0x19   :  { %695 = vmatpush3.msra.mxu1 %v66_v48  ;;  %661 = vmatprep.subr.mxu0 %v49_v49  ;;  %v108_v20 = vld [vmem:[%s1311_s1 + $0x278] sm:$0xff]  ;;  %v107_v24 = vld [vmem:[%s1311_s1 + $0x270] sm:$0xff]  ;;  %v122_v26 = vld [vmem:[%s1311_s1 + $0x2e8] sm:$0xff] }
  0x1a   :  { %696 = vmatprep.subr.mxu1 %v81_v50  ;;  %662 = vmatpush3.msra.mxu0 %v33_v51  ;;  %v140_v21 = vld [vmem:[%s1311_s1 + $0x378] sm:$0xff]  ;;  %v139_v25 = vld [vmem:[%s1311_s1 + $0x370] sm:$0xff]  ;;  %v154_v27 = vld [vmem:[%s1311_s1 + $0x3e8] sm:$0xff] }
  0x1b   :  { %697 = vmatpush3.msra.mxu1 %v65_v52  ;;  %663 = vmatprep.subr.mxu0 %v48_v53  ;;  %v106_v28 = vld [vmem:[%s1311_s1 + $0x268] sm:$0xff]  ;;  %v121_v30 = vld [vmem:[%s1311_s1 + $0x2e0] sm:$0xff]  ;;  %v120_v34 = vld [vmem:[%s1311_s1 + $0x2d8] sm:$0xff] }
  0x1c   :  { %698 = vmatprep.subr.mxu1 %v80_v54  ;;  %664 = vmatpush3.msra.mxu0 %v32_v56  ;;  %v138_v29 = vld [vmem:[%s1311_s1 + $0x368] sm:$0xff]  ;;  %v153_v31 = vld [vmem:[%s1311_s1 + $0x3e0] sm:$0xff]  ;;  %v152_v35 = vld [vmem:[%s1311_s1 + $0x3d8] sm:$0xff] }
  0x1d   :  { %699 = vmatpush3.msra.mxu1 %v64_v58  ;;  %665 = vmatprep.subr.mxu0 %v47_v61  ;;  %v105_v32 = vld [vmem:[%s1311_s1 + $0x260] sm:$0xff]  ;;  %v104_v36 = vld [vmem:[%s1311_s1 + $0x258] sm:$0xff]  ;;  %v119_v38 = vld [vmem:[%s1311_s1 + $0x2d0] sm:$0xff] }
  0x1e   :  { %700 = vmatprep.subr.mxu1 %v79_v62  ;;  %666 = vmatpush3.msra.mxu0 %v31_v1  ;;  %v137_v33 = vld [vmem:[%s1311_s1 + $0x360] sm:$0xff]  ;;  %v136_v37 = vld [vmem:[%s1311_s1 + $0x358] sm:$0xff]  ;;  %v151_v39 = vld [vmem:[%s1311_s1 + $0x3d0] sm:$0xff] }
  0x1f   :  { %701 = vmatpush3.msra.mxu1 %v63_v2  ;;  %667 = vmatprep.subr.mxu0 %v46_v4  ;;  %v103_v40 = vld [vmem:[%s1311_s1 + $0x250] sm:$0xff]  ;;  %v118_v42 = vld [vmem:[%s1311_s1 + $0x2c8] sm:$0xff]  ;;  %v117_v46 = vld [vmem:[%s1311_s1 + $0x2c0] sm:$0xff] }
  0x20   :  { %702 = vmatprep.subr.mxu1 %v78_v5  ;;  %668 = vmatpush3.msra.mxu0 %v30_v8  ;;  %v135_v41 = vld [vmem:[%s1311_s1 + $0x350] sm:$0xff]  ;;  %v150_v43 = vld [vmem:[%s1311_s1 + $0x3c8] sm:$0xff]  ;;  %v149_v47 = vld [vmem:[%s1311_s1 + $0x3c0] sm:$0xff] }
  0x21   :  { %703 = vmatpush3.msra.mxu1 %v62_v9  ;;  %669 = vmatprep.subr.mxu0 %v45_v10  ;;  %v102_v44 = vld [vmem:[%s1311_s1 + $0x248] sm:$0xff]  ;;  %v101_v48 = vld [vmem:[%s1311_s1 + $0x240] sm:$0xff]  ;;  %v116_v50 = vld [vmem:[%s1311_s1 + $0x2b8] sm:$0xff] }
  0x22   :  { %704 = vmatprep.subr.mxu1 %v77_v11  ;;  %670 = vmatpush3.msra.mxu0 %v29_v13  ;;  %v134_v45 = vld [vmem:[%s1311_s1 + $0x348] sm:$0xff]  ;;  %v133_v49 = vld [vmem:[%s1311_s1 + $0x340] sm:$0xff]  ;;  %v148_v51 = vld [vmem:[%s1311_s1 + $0x3b8] sm:$0xff] }
  0x23   :  { %316 = vmatprep.mubr.f32.mxu0 %v205_v12  ;;  %705 = vmatpush3.msra.mxu1 %v61_v15  ;;  %v100_v52 = vld [vmem:[%s1311_s1 + $0x238] sm:$0xff]  ;;  %v115_v54 = vld [vmem:[%s1311_s1 + $0x2b0] sm:$0xff]  ;;  %v114_v59 = vld [vmem:[%s1311_s1 + $0x2a8] sm:$0xff] }
  0x24   :  { %317 = vmatmul.mubr.f32.vlgmr.msra.gmra.mxu0 %v204_v14  ;;  %386 = vmatprep.mubr.f32.mxu1 %v207_v16  ;;  %v132_v53 = vld [vmem:[%s1311_s1 + $0x338] sm:$0xff]  ;;  %v147_v56 = vld [vmem:[%s1311_s1 + $0x3b0] sm:$0xff]  ;;  %v146_v60 = vld [vmem:[%s1311_s1 + $0x3a8] sm:$0xff] }
  0x25   :  { %709 = vmatprep.subr.mxu0 %v124_v17  ;;  %744 = vmatprep.subr.mxu1 %v156_v19  ;;  %v99_v57 = vld [vmem:[%s1311_s1 + $0x230] sm:$0xff]  ;;  %v98_v61 = vld [vmem:[%s1311_s1 + $0x228] sm:$0xff]  ;;  %v113_v63 = vld [vmem:[%s1311_s1 + $0x2a0] sm:$0xff] }
  0x26   :  { %387 = vmatmul.mubr.f32.vlgmr.msra.gmra.mxu1 %v206_v18  ;;  %710 = vmatpush3.msra.mxu0 %v108_v20  ;;  %v131_v58 = vld [vmem:[%s1311_s1 + $0x330] sm:$0xff]  ;;  %v130_v62 = vld [vmem:[%s1311_s1 + $0x328] sm:$0xff]  ;;  %v145_v0 = vld [vmem:[%s1311_s1 + $0x3a0] sm:$0xff] }
  0x27   :  { %745 = vmatpush3.msra.mxu1 %v140_v21  ;;  %711 = vmatprep.subr.mxu0 %v123_v22  ;;  %v97_v1 = vld [vmem:[%s1311_s1 + $0x220] sm:$0xff]  ;;  %v807_v2 = vld [vmem:[%s1310_s0 + $0x8] ss:$16 sps:$4 sm:$0xff]   ;;  %v811_v5 = vld [vmem:[%s1310_s0 + $0xc] ss:$16 sps:$4 sm:$0xff]  }
  0x28   :  { %746 = vmatprep.subr.mxu1 %v155_v23  ;;  %712 = vmatpush3.msra.mxu0 %v107_v24  ;;  %v809_v3 = vld [vmem:[%s1310_s0 + $0x28] ss:$16 sps:$4 sm:$0xff]   ;;  %v129_v4 = vld [vmem:[%s1311_s1 + $0x320] sm:$0xff]  ;;  %v812_v6 = vld [vmem:[%s1310_s0 + $0x2c] ss:$16 sps:$4 sm:$0xff]   ;;  %v218_v13 = vrot.slane %v807_v2, %v1021_v55  ;;  %v225_v17 = vrot.slane %v811_v5, %v1021_v55 }
  0x29   :  { %747 = vmatpush3.msra.mxu1 %v139_v25  ;;  %713 = vmatprep.subr.mxu0 %v122_v26  ;;  %v112_v7 = vld [vmem:[%s1311_s1 + $0x298] sm:$0xff]  ;;  %v111_v11 = vld [vmem:[%s1311_s1 + $0x290] sm:$0xff]  ;;  %v232_v14 = vrot.slane %v809_v3, %v1021_v55  ;;  %v239_v18 = vrot.slane %v812_v6, %v1021_v55  ;;  %v110_v19 = vld [vmem:[%s1311_s1 + $0x288] sm:$0xff] }
  0x2a   :  { %748 = vmatprep.subr.mxu1 %v154_v27  ;;  %714 = vmatpush3.msra.mxu0 %v106_v28  ;;  %v144_v8 = vld [vmem:[%s1311_s1 + $0x398] sm:$0xff]  ;;  %v143_v12 = vld [vmem:[%s1311_s1 + $0x390] sm:$0xff]  ;;  %v142_v20 = vld [vmem:[%s1311_s1 + $0x388] sm:$0xff] }
  0x2b   :  { %749 = vmatpush3.msra.mxu1 %v138_v29  ;;  %715 = vmatprep.subr.mxu0 %v121_v30  ;;  %v96_v9 = vld [vmem:[%s1311_s1 + $0x218] sm:$0xff]  ;;  %v95_v15 = vld [vmem:[%s1311_s1 + $0x210] sm:$0xff]  ;;  %v94_v21 = vld [vmem:[%s1311_s1 + $0x208] sm:$0xff]  ;;  %v241_v24 = vcombine.high %v218_v13, %v232_v14  ;;  %v243_v26 = vcombine.high %v225_v17, %v239_v18  ;;  %v240_v28 = vcombine.low %v218_v13, %v232_v14  ;;  %v836_v30 = vmov 0.0  }
  0x2c   :  { %750 = vmatprep.subr.mxu1 %v153_v31  ;;  %716 = vmatpush3.msra.mxu0 %v105_v32  ;;  %v128_v10 = vld [vmem:[%s1311_s1 + $0x318] sm:$0xff]  ;;  %v127_v16 = vld [vmem:[%s1311_s1 + $0x310] sm:$0xff]  ;;  %v126_v55 = vld [vmem:[%s1311_s1 + $0x308] sm:$0xff]  ;;  %v242_v29 = vcombine.low %v225_v17, %v239_v18 }
  0x2d   :  { %751 = vmatpush3.msra.mxu1 %v137_v33  ;;  %717 = vmatprep.subr.mxu0 %v120_v34  ;;  %v109_v22 = vld [vmem:[%s1311_s1 + $0x280] sm:$0xff]  ;;  %v536_v31 = vld [vmem:[%s1313_s3 + $0x18] sm:$0xff]  ;;  %v535_v32 = vld [vmem:[%s1313_s3 + $0x10] sm:$0xff] }
  0x2e   :  { %752 = vmatprep.subr.mxu1 %v152_v35  ;;  %718 = vmatpush3.msra.mxu0 %v104_v36  ;;  %v141_v23 = vld [vmem:[%s1311_s1 + $0x380] sm:$0xff]  ;;  %v534_v33 = vld [vmem:[%s1313_s3 + $0x8] sm:$0xff] }
  0x2f   :  { %753 = vmatpush3.msra.mxu1 %v136_v37  ;;  %719 = vmatprep.subr.mxu0 %v119_v38  ;;  %v93_v25 = vld [vmem:[%s1311_s1 + $0x200] sm:$0xff] }
  0x30   :  { %754 = vmatprep.subr.mxu1 %v151_v39  ;;  %720 = vmatpush3.msra.mxu0 %v103_v40  ;;  %v125_v27 = vld [vmem:[%s1311_s1 + $0x300] sm:$0xff] }
  0x31   :  { %755 = vmatpush3.msra.mxu1 %v135_v41  ;;  %721 = vmatprep.subr.mxu0 %v118_v42  ;;  %v533_v34 = vld [vmem:[%s1313_s3] sm:$0xff] }
  0x32   :  { %756 = vmatprep.subr.mxu1 %v150_v43  ;;  %722 = vmatpush3.msra.mxu0 %v102_v44  ;;  %v636_v39 = vld [vmem:[%s1312_s2] ss:$0 sm:$0xff] }
  0x33   :  { %757 = vmatpush3.msra.mxu1 %v134_v45  ;;  %723 = vmatprep.subr.mxu0 %v117_v46 }
  0x34   :  { %758 = vmatprep.subr.mxu1 %v149_v47  ;;  %724 = vmatpush3.msra.mxu0 %v101_v48 }
  0x35   :  { %759 = vmatpush3.msra.mxu1 %v133_v49  ;;  %725 = vmatprep.subr.mxu0 %v116_v50 }
  0x36   :  { %760 = vmatprep.subr.mxu1 %v148_v51  ;;  %726 = vmatpush3.msra.mxu0 %v100_v52 }
  0x37   :  { %761 = vmatpush3.msra.mxu1 %v132_v53  ;;  %727 = vmatprep.subr.mxu0 %v115_v54  ;;  %v637_v53 = vld [vmem:[%s1314_s4] ss:$0 sm:$0xff] }
  0x38   :  { %762 = vmatprep.subr.mxu1 %v147_v56  ;;  %728 = vmatpush3.msra.mxu0 %v99_v57 }
  0x39   :  { %763 = vmatpush3.msra.mxu1 %v131_v58  ;;  %729 = vmatprep.subr.mxu0 %v114_v59 }
  0x3a   :  { %764 = vmatprep.subr.mxu1 %v146_v60  ;;  %730 = vmatpush3.msra.mxu0 %v98_v61 }
  0x3b   :  { %765 = vmatpush3.msra.mxu1 %v130_v62  ;;  %731 = vmatprep.subr.mxu0 %v113_v63 }
  0x3c   :  { %766 = vmatprep.subr.mxu1 %v145_v0  ;;  %732 = vmatpush3.msra.mxu0 %v97_v1 }
  0x3d   :  { %767 = vmatpush3.msra.mxu1 %v129_v4  ;;  %733 = vmatprep.subr.mxu0 %v112_v7 }
  0x3e   :  { %768 = vmatprep.subr.mxu1 %v144_v8  ;;  %734 = vmatpush3.msra.mxu0 %v96_v9 }
  0x3f   :  { %769 = vmatpush3.msra.mxu1 %v128_v10  ;;  %735 = vmatprep.subr.mxu0 %v111_v11 }
  0x40   :  { %770 = vmatprep.subr.mxu1 %v143_v12  ;;  %736 = vmatpush3.msra.mxu0 %v95_v15 }
  0x41   :  { %771 = vmatpush3.msra.mxu1 %v127_v16  ;;  %737 = vmatprep.subr.mxu0 %v110_v19 }
  0x42   :  { %772 = vmatprep.subr.mxu1 %v142_v20  ;;  %738 = vmatpush3.msra.mxu0 %v94_v21 }
  0x43   :  { %773 = vmatpush3.msra.mxu1 %v126_v55  ;;  %739 = vmatprep.subr.mxu0 %v109_v22 }
  0x44   :  { %774 = vmatprep.subr.mxu1 %v141_v23  ;;  %740 = vmatpush3.msra.mxu0 %v93_v25 }
  0x45   :  { %456 = vmatprep.mubr.f32.mxu0 %v241_v24  ;;  %775 = vmatpush3.msra.mxu1 %v125_v27 }
  0x46   :  { %526 = vmatprep.mubr.f32.mxu1 %v243_v26  ;;  %457 = vmatmul.mubr.f32.vlgmr.msra.gmra.mxu0 %v240_v28 }
  0x47   :  { %527 = vmatmul.mubr.f32.vlgmr.msra.gmra.mxu1 %v242_v29  ;;  %784 = vmatprep.subr.mxu0 %v836_v30 }
  0x48   :  { %785 = vmatpush3.msra.mxu0 %v536_v31  ;;  %792 = vmatprep.mubr.msk.f32.mxu0 %vm837_vm0, %v836_v30 }
  0x49   :  { %786 = vmatprep.subr.mxu0 %v836_v30 }
  0x4a   :  { %787 = vmatpush3.msra.mxu0 %v535_v32 }
  0x4b   :  { %788 = vmatprep.subr.mxu0 %v836_v30 }
  0x4c   :  { %789 = vmatpush3.msra.mxu0 %v534_v33 }
  0x4d   :  { %790 = vmatprep.subr.mxu0 %v836_v30 }
  0x4e   :  { %791 = vmatpush3.msra.mxu0 %v533_v34 }
  0xe4   :  { %v671_v35 = vpop.f32.mrf.mxu0 }
  0xe6   :  { %v706_v36 = vpop.f32.mrf.mxu1  ;;  %v672_v37 = vpop.f32.mrf.mxu0 }
  0xe7   :  { %v673_v38 = vadd.f32 %v672_v37, %v671_v35 }
  0xe8   :  { %v707_v40 = vpop.f32.mrf.mxu1 }
  0xe9   :  { %v319_v41 = vadd.f32 %v673_v38, %v636_v39  ;;  %v708_v42 = vadd.f32 %v707_v40, %v706_v36 }
  0xeb   :  { %v389_v47 = vadd.f32 %v708_v42, %v319_v41 }
 0x106   :  { %v741_v43 = vpop.f32.mrf.mxu0 }
 0x107   :  { %v776_v44 = vpop.f32.mrf.mxu1 }
 0x108   :  { %v742_v45 = vpop.f32.mrf.mxu0 }
 0x109   :  { %v777_v46 = vpop.f32.mrf.mxu1  ;;  %v743_v48 = vadd.f32 %v742_v45, %v741_v43 }
 0x10a   :  { %v778_v50 = vadd.f32 %v777_v46, %v776_v44 }
 0x10b   :  { %v459_v49 = vadd.f32 %v743_v48, %v389_v47 }
 0x10d   :  { %v529_v51 = vadd.f32 %v778_v50, %v459_v49 }
 0x10f   :  { %v532_v52 = vmax.f32 %v529_v51, 0.0 }
 0x111   :  { %793 = vmatmul.mubr.msk.f32.vlgmr.msra.gmra.mxu0 %vm544_vm1, %v532_v52 }
 0x1d1   :  { %v614_v54 = vpop.f32.mrf.mxu0 }
 0x1d2   :  { %v615_v56 = vadd.f32 %v637_v53, %v614_v54 }
 0x1d3   :  { %v794_v57 = vpop.f32.mrf.mxu0 }
 0x1d4   :  { %619 = vst.msk [vmem:[#allocation2] sm:$0xff] %vm618_vm2, %v615_v56 }
 0x1d5   :  { %624 = vsyncadd [#allocation3], 96  ;;  %s838_s2 = smov [#allocation2]  }
 0x1d6   :  { %s625_s23 = sshll.u32 %s838_s2, 4  ;;  %s626_s23 = int_to_ptr.vmem [resolvable:$true] %s625_s23 }
 0x1d7   :  { %s813_s24 = scalar_lea.vmem %s626_s23, 32  ;;  %s817_s25 = scalar_lea.vmem %s626_s23, 128 }
 0x1d8   :  { %p814_p0 = scmp.ne.s32.totalorder %s626_s23, %s813_s24  ;;  %p818_p1 = scmp.lt.s32.totalorder %s626_s23, %s626_s23 }
 0x1d9   :  { %p819_p2 = scmp.lt.s32.totalorder %s817_s25, %s813_s24 }
 0x1db   :  { %p820_p3 = por %p819_p2, %p818_p1 }
 0x1dd   :  { %p821_p4 = pnand %p820_p3, %p814_p0 }
 0x1df   :  { %824 = shalt.err (!%p821_p4)
}
 0x1e0   :  { %s839_s26 = smov 32   ;;  %s840_s27 = smov 2  }
 0x1e1   :  { %631 = dma.vmem_to_hbm [thread:$0]  %s626_s23, 32, %s1315_s5, [#allocation3], %s839_s26, %s839_s26, %s840_s27  }
 0x1e2   :  { %833 = dma.done.wait [#allocation3], 128  }
 0x1e3   :  { %834 = vsyncadd [#allocation3], 4294967168 }
 0x1e4   :  { %635 = vsyncpa [#allocation3], 1 }

</bundles_post_ra>
